<compile_context>
chip_gen: v7x
topology: tpu7x:2x2x1
jax: 0.10.0
libtpu: 0.0.40
codegen_flags: <defaults>
</compile_context>

<pallas_src>
import functools

import jax
import jax.numpy as jnp
from jax.experimental import pallas as pl
from jax.experimental.pallas import tpu as pltpu

F32 = jnp.float32
BF16 = jnp.bfloat16

N_BRANCHES = 3        # n   (f, s, c concatenated on the channel dim)
N_FEATS = 40          # n_feats (module default)


# ----------------------------- Pallas kernels -------------------------------

def _player_kernel(p_ref, wp_ref, y_ref):
    """p_layer: 1x1 conv (C->C, bias=False) + ReLU as a lane-dense GEMM.

    Y(C, HW) = relu( Wp(C, C) @ P(C, HW) ),  bf16 MXU inputs, f32 accumulate.
    """
    acc = jnp.dot(wp_ref[...], p_ref[0].astype(BF16),
                  preferred_element_type=jnp.float32)
    y_ref[0] = jnp.maximum(acc, 0.0).astype(y_ref.dtype)


def _attn_kernel(scale_ref, p_ref, y_ref, y2_ref, w3_ref, o_ref, *, n_feats):
    """Attention map + softmax(dim=2) + scale gate + conv3 + residual f."""
    p = p_ref[0]                                   # (C, HW)  f32
    y = y_ref[0]                                   # (C, HW)  bf16  (= p_feats)
    y2 = y2_ref[0]                                 # (HW, C)  bf16  (torch .view)

    # attention_map = bmm(p_feats.view(c,hw), p_feats.view(hw,c)) -> (C, C)
    a = jnp.dot(y, y2, preferred_element_type=jnp.float32)

    # nn.Softmax(dim=2): softmax over the last axis of the (C, C) map, f32.
    a = a - jnp.max(a, axis=-1, keepdims=True)
    e = jnp.exp(a)
    a = e * pl.reciprocal(jnp.sum(e, axis=-1, keepdims=True), approx=True)

    # attention_feature1 = bmm(A, p_feats.view(c,hw)) -> (C, HW), lane-dense.
    att = jnp.dot(a.astype(BF16), y, preferred_element_type=jnp.float32)

    # attention_feature = scale1 * attention_feature1 + p      (f32)
    af = scale_ref[0] * att + p

    # conv3: 1x1 conv (C -> n_feats, bias=False); residual f = p[:n_feats].
    out = jnp.dot(w3_ref[...], af.astype(BF16),
                  preferred_element_type=jnp.float32)
    o_ref[0] = (out + p[:n_feats, :]).astype(o_ref.dtype)


# ------------------------------- forward ------------------------------------

def pla7_forward(params, f, s, c):
    """PLA7.forward(f, s, c); f/s/c: (B, n_feats, H, W) NCHW float32."""
    B, NF, H, W = f.shape
    HW = H * W
    C = N_BRANCHES * NF

    # p = torch.cat((f, s, c), dim=1), flattened to (B, C, HW).  The concat is
    # the only data-movement glue left outside the kernels.
    p = jnp.concatenate([f, s, c], axis=1).reshape(B, C, HW)

    wp = params["w_p"].astype(BF16)                 # (C, C)   bf16 MXU feed
    w3 = params["w_conv3"].astype(BF16)             # (NF, C)
    scale = params["scale1"].astype(F32)            # (1,)

    # Batch grid is "parallel": with B>=2 both v7x TensorCores are used.
    # (For B==1 inference, split HW into a second parallel axis instead.)
    parallel = pltpu.CompilerParams(dimension_semantics=("parallel",))

    # ---- kernel A: p_feats = ReLU(1x1 conv(p)) ------------------------------
    y = pl.pallas_call(
        _player_kernel,
        grid=(B,),
        in_specs=[
            pl.BlockSpec((1, C, HW), lambda b: (b, 0, 0)),
            pl.BlockSpec((C, C), lambda b: (0, 0)),
        ],
        out_specs=pl.BlockSpec((1, C, HW), lambda b: (b, 0, 0)),
        out_shape=jax.ShapeDtypeStruct((B, C, HW), BF16),
        compiler_params=parallel,
        cost_estimate=pl.CostEstimate(
            flops=2 * B * C * C * HW,
            transcendentals=0,
            bytes_accessed=B * C * HW * 4 + C * C * 2 + B * C * HW * 2),
    )(p, wp)

    # torch: feature_group_reshape1.view(b, h*w, c) -- row-major re-flatten
    # (NOT a transpose); a free bitcast in XLA with default layouts.
    y2 = y.reshape(B, HW, C)

    # ---- kernel B: attention + scale gate + conv3 + residual ----------------
    out = pl.pallas_call(
        functools.partial(_attn_kernel, n_feats=NF),
        grid=(B,),
        in_specs=[
            pl.BlockSpec(memory_space=pltpu.MemorySpace.SMEM),      # scale1
            pl.BlockSpec((1, C, HW), lambda b: (b, 0, 0)),          # p
            pl.BlockSpec((1, C, HW), lambda b: (b, 0, 0)),          # p_feats
            pl.BlockSpec((1, HW, C), lambda b: (b, 0, 0)),          # p_feats.view
            pl.BlockSpec((NF, C), lambda b: (0, 0)),                # conv3 weight
        ],
        out_specs=pl.BlockSpec((1, NF, HW), lambda b: (b, 0, 0)),
        out_shape=jax.ShapeDtypeStruct((B, NF, HW), F32),
        compiler_params=parallel,
        cost_estimate=pl.CostEstimate(
            flops=2 * B * (C * HW * C + C * C * HW + NF * C * HW),
            transcendentals=B * C * C,
            bytes_accessed=B * (C * HW * 4 + 2 * C * HW * 2 + NF * HW * 4)
                           + NF * C * 2),
    )(scale, p, y, y2, w3)

    return out.reshape(B, NF, H, W)


# ----------------------------- parameter init --------------------------------

def init_params(key, n=N_BRANCHES, n_feats=N_FEATS):
    C = n * n_feats
    k1, k2 = jax.random.split(key)
    return {
        # conv(n_feats*n, n_feats*n, kernel_size=1, bias=False) -> weight (out, in)
        "w_p": jax.random.normal(k1, (C, C), F32) * (2.0 / C) ** 0.5,
        # conv(n_feats*n, n_feats, kernel_size=1, bias=False)
        "w_conv3": jax.random.normal(k2, (n_feats, C), F32) * (2.0 / C) ** 0.5,
        # nn.Parameter(torch.zeros(1))
        "scale1": jnp.zeros((1,), F32),
    }


# ---------------------------------- main --------------------------------------

if __name__ == "__main__":
    key = jax.random.PRNGKey(0)
    kp, kf, ks, kc = jax.random.split(key, 4)
    params = init_params(kp)

    B, H, W = 2, 16, 16
    f = jax.random.normal(kf, (B, N_FEATS, H, W), F32)   # NCHW, 40 channels
    s = jax.random.normal(ks, (B, N_FEATS, H, W), F32)
    c = jax.random.normal(kc, (B, N_FEATS, H, W), F32)

    fwd = jax.jit(pla7_forward)
    out = fwd(params, f, s, c)
    jax.block_until_ready(out)

    assert out.shape == (B, N_FEATS, H, W), out.shape
    assert bool(jnp.isfinite(out).all())
    print("KERNEL_OK")
</pallas_src>

<mosaic_0001>
module attributes {stable_mosaic.version = 11 : i64} {
  func.func @_player_kernel(%arg0: i32, %arg1: memref<1x120x256xf32, #tpu.memory_space<vmem>>, %arg2: memref<120x120xbf16, #tpu.memory_space<vmem>>, %arg3: memref<1x120x256xbf16, #tpu.memory_space<vmem>>) attributes {dimension_semantics = [#tpu.dimension_semantics<parallel>], iteration_bounds = array<i64: 2>, scalar_prefetch = 0 : i64, scratch_operands = 0 : i64, tpu.core_type = #tpu.core_type<tc>, window_params = [{transform_indices = @transform_0, window_bounds = array<i64: 1, 120, 256>}, {pipeline_mode = #tpu.pipeline_mode<synchronous>, transform_indices = @transform_1, window_bounds = array<i64: 120, 120>}, {transform_indices = @transform_2, window_bounds = array<i64: 1, 120, 256>}]} {
    %c0 = arith.constant 0 : index
    %c0_0 = arith.constant 0 : index
    %0 = vector.load %arg2[%c0, %c0_0] : memref<120x120xbf16, #tpu.memory_space<vmem>>, vector<120x120xbf16>
    %c0_1 = arith.constant 0 : index
    %c0_2 = arith.constant 0 : index
    %c0_3 = arith.constant 0 : index
    %1 = vector.load %arg1[%c0_1, %c0_2, %c0_3] : memref<1x120x256xf32, #tpu.memory_space<vmem>>, vector<1x120x256xf32>
    %2 = vector.shape_cast %1 : vector<1x120x256xf32> to vector<120x256xf32>
    %3 = arith.truncf %2 : vector<120x256xf32> to vector<120x256xbf16>
    %cst = arith.constant dense<0.000000e+00> : vector<120x256xf32>
    %4 = tpu.matmul %0, %3, %cst {dimension_numbers = #tpu.dot_dimension_numbers<[1], [0], [0], [1], [0, 0, 1, 1], [], []>} : vector<120x120xbf16>, vector<120x256xbf16>, vector<120x256xf32> -> vector<120x256xf32>
    %cst_4 = arith.constant 0.000000e+00 : f32
    %5 = vector.broadcast %cst_4 : f32 to vector<120x256xf32>
    %6 = arith.maximumf %4, %5 : vector<120x256xf32>
    %7 = arith.truncf %6 : vector<120x256xf32> to vector<120x256xbf16>
    %c0_5 = arith.constant 0 : index
    %c0_6 = arith.constant 0 : index
    %c0_7 = arith.constant 0 : index
    %8 = vector.load %arg3[%c0_5, %c0_6, %c0_7] : memref<1x120x256xbf16, #tpu.memory_space<vmem>>, vector<1x120x256xbf16>
    %9 = vector.shape_cast %8 : vector<1x120x256xbf16> to vector<120x256xbf16>
    %10 = vector.shape_cast %7 : vector<120x256xbf16> to vector<1x120x256xbf16>
    tpu.vector_store %arg3[%c0_5, %c0_6, %c0_7], %10 {strides = array<i32>} : memref<1x120x256xbf16, #tpu.memory_space<vmem>>, vector<1x120x256xbf16>,
    return
  }
  func.func @transform_0(%arg0: i32) -> (i32, i32, i32) {
    %c0_i32 = arith.constant 0 : i32
    %c0_i32_0 = arith.constant 0 : i32
    %c0_i32_1 = arith.constant 0 : i32
    return %arg0, %c0_i32, %c0_i32_0 : i32, i32, i32
  }
  func.func @transform_1(%arg0: i32) -> (i32, i32) {
    %c0_i32 = arith.constant 0 : i32
    %c0_i32_0 = arith.constant 0 : i32
    %c0_i32_1 = arith.constant 0 : i32
    return %c0_i32, %c0_i32_0 : i32, i32
  }
  func.func @transform_2(%arg0: i32) -> (i32, i32, i32) {
    %c0_i32 = arith.constant 0 : i32
    %c0_i32_0 = arith.constant 0 : i32
    %c0_i32_1 = arith.constant 0 : i32
    return %arg0, %c0_i32, %c0_i32_0 : i32, i32, i32
  }
}

module attributes {stable_mosaic.version = 11 : i64} {
  func.func @_attn_kernel(%arg0: i32, %arg1: memref<1xf32, #tpu.memory_space<smem>>, %arg2: memref<1x120x256xf32, #tpu.memory_space<vmem>>, %arg3: memref<1x120x256xbf16, #tpu.memory_space<vmem>>, %arg4: memref<1x256x120xbf16, #tpu.memory_space<vmem>>, %arg5: memref<40x120xbf16, #tpu.memory_space<vmem>>, %arg6: memref<1x40x256xf32, #tpu.memory_space<vmem>>) attributes {dimension_semantics = [#tpu.dimension_semantics<parallel>], iteration_bounds = array<i64: 2>, scalar_prefetch = 0 : i64, scratch_operands = 0 : i64, tpu.core_type = #tpu.core_type<tc>, window_params = [{transform_indices = @transform_0, window_bounds = array<i64: 1>}, {transform_indices = @transform_1, window_bounds = array<i64: 1, 120, 256>}, {transform_indices = @transform_2, window_bounds = array<i64: 1, 120, 256>}, {transform_indices = @transform_3, window_bounds = array<i64: 1, 256, 120>}, {pipeline_mode = #tpu.pipeline_mode<synchronous>, transform_indices = @transform_4, window_bounds = array<i64: 40, 120>}, {transform_indices = @transform_5, window_bounds = array<i64: 1, 40, 256>}]} {
    %c0 = arith.constant 0 : index
    %c0_0 = arith.constant 0 : index
    %c0_1 = arith.constant 0 : index
    %0 = vector.load %arg2[%c0, %c0_0, %c0_1] : memref<1x120x256xf32, #tpu.memory_space<vmem>>, vector<1x120x256xf32>
    %1 = vector.shape_cast %0 : vector<1x120x256xf32> to vector<120x256xf32>
    %c0_2 = arith.constant 0 : index
    %c0_3 = arith.constant 0 : index
    %c0_4 = arith.constant 0 : index
    %2 = vector.load %arg3[%c0_2, %c0_3, %c0_4] : memref<1x120x256xbf16, #tpu.memory_space<vmem>>, vector<1x120x256xbf16>
    %3 = vector.shape_cast %2 : vector<1x120x256xbf16> to vector<120x256xbf16>
    %c0_5 = arith.constant 0 : index
    %c0_6 = arith.constant 0 : index
    %c0_7 = arith.constant 0 : index
    %4 = vector.load %arg4[%c0_5, %c0_6, %c0_7] : memref<1x256x120xbf16, #tpu.memory_space<vmem>>, vector<1x256x120xbf16>
    %5 = vector.shape_cast %4 : vector<1x256x120xbf16> to vector<256x120xbf16>
    %cst = arith.constant dense<0.000000e+00> : vector<120x120xf32>
    %6 = tpu.matmul %3, %5, %cst {dimension_numbers = #tpu.dot_dimension_numbers<[1], [0], [0], [1], [0, 0, 1, 1], [], []>} : vector<120x256xbf16>, vector<256x120xbf16>, vector<120x120xf32> -> vector<120x120xf32>
    %cst_8 = arith.constant dense<0xFF800000> : vector<120xf32>
    %7 = vector.multi_reduction <maximumf>, %6, %cst_8 [1] : vector<120x120xf32> to vector<120xf32>
    %8 = vector.shape_cast %7 : vector<120xf32> to vector<120x1xf32>
    %9 = vector.broadcast %8 : vector<120x1xf32> to vector<120x120xf32>
    %10 = arith.subf %6, %9 : vector<120x120xf32>
    %11 = math.exp %10 : vector<120x120xf32>
    %cst_9 = arith.constant dense<0.000000e+00> : vector<120xf32>
    %12 = vector.multi_reduction <add>, %11, %cst_9 [1] : vector<120x120xf32> to vector<120xf32>
    %13 = vector.shape_cast %12 : vector<120xf32> to vector<120x1xf32>
    %14 = tpu.reciprocal %13 {approx = true} : vector<120x1xf32> -> vector<120x1xf32>
    %15 = vector.broadcast %14 : vector<120x1xf32> to vector<120x120xf32>
    %16 = arith.mulf %11, %15 : vector<120x120xf32>
    %17 = arith.truncf %16 : vector<120x120xf32> to vector<120x120xbf16>
    %cst_10 = arith.constant dense<0.000000e+00> : vector<120x256xf32>
    %18 = tpu.matmul %17, %3, %cst_10 {dimension_numbers = #tpu.dot_dimension_numbers<[1], [0], [0], [1], [0, 0, 1, 1], [], []>} : vector<120x120xbf16>, vector<120x256xbf16>, vector<120x256xf32> -> vector<120x256xf32>
    %c0_11 = arith.constant 0 : index
    %19 = memref.load %arg1[%c0_11] : memref<1xf32, #tpu.memory_space<smem>>
    %20 = vector.broadcast %19 : f32 to vector<120x256xf32>
    %21 = arith.mulf %20, %18 : vector<120x256xf32>
    %22 = arith.addf %21, %1 : vector<120x256xf32>
    %c0_12 = arith.constant 0 : index
    %c0_13 = arith.constant 0 : index
    %23 = vector.load %arg5[%c0_12, %c0_13] : memref<40x120xbf16, #tpu.memory_space<vmem>>, vector<40x120xbf16>
    %24 = arith.truncf %22 : vector<120x256xf32> to vector<120x256xbf16>
    %cst_14 = arith.constant dense<0.000000e+00> : vector<40x256xf32>
    %25 = tpu.matmul %23, %24, %cst_14 {dimension_numbers = #tpu.dot_dimension_numbers<[1], [0], [0], [1], [0, 0, 1, 1], [], []>} : vector<40x120xbf16>, vector<120x256xbf16>, vector<40x256xf32> -> vector<40x256xf32>
    %26 = vector.extract_strided_slice %1 {offsets = [0, 0], sizes = [40, 256], strides = [1, 1]} : vector<120x256xf32> to vector<40x256xf32>
    %27 = arith.addf %25, %26 : vector<40x256xf32>
    %c0_15 = arith.constant 0 : index
    %c0_16 = arith.constant 0 : index
    %c0_17 = arith.constant 0 : index
    %28 = vector.load %arg6[%c0_15, %c0_16, %c0_17] : memref<1x40x256xf32, #tpu.memory_space<vmem>>, vector<1x40x256xf32>
    %29 = vector.shape_cast %28 : vector<1x40x256xf32> to vector<40x256xf32>
    %30 = vector.shape_cast %27 : vector<40x256xf32> to vector<1x40x256xf32>
    tpu.vector_store %arg6[%c0_15, %c0_16, %c0_17], %30 {strides = array<i32>} : memref<1x40x256xf32, #tpu.memory_space<vmem>>, vector<1x40x256xf32>,
    return
  }
  func.func @transform_0(%arg0: i32) -> i32 {
    %c0_i32 = arith.constant 0 : i32
    %c0_i32_0 = arith.constant 0 : i32
    return %c0_i32 : i32
  }
  func.func @transform_1(%arg0: i32) -> (i32, i32, i32) {
    %c0_i32 = arith.constant 0 : i32
    %c0_i32_0 = arith.constant 0 : i32
    %c0_i32_1 = arith.constant 0 : i32
    return %arg0, %c0_i32, %c0_i32_0 : i32, i32, i32
  }
  func.func @transform_2(%arg0: i32) -> (i32, i32, i32) {
    %c0_i32 = arith.constant 0 : i32
    %c0_i32_0 = arith.constant 0 : i32
    %c0_i32_1 = arith.constant 0 : i32
    return %arg0, %c0_i32, %c0_i32_0 : i32, i32, i32
  }
  func.func @transform_3(%arg0: i32) -> (i32, i32, i32) {
    %c0_i32 = arith.constant 0 : i32
    %c0_i32_0 = arith.constant 0 : i32
    %c0_i32_1 = arith.constant 0 : i32
    return %arg0, %c0_i32, %c0_i32_0 : i32, i32, i32
  }
  func.func @transform_4(%arg0: i32) -> (i32, i32) {
    %c0_i32 = arith.constant 0 : i32
    %c0_i32_0 = arith.constant 0 : i32
    %c0_i32_1 = arith.constant 0 : i32
    return %c0_i32, %c0_i32_0 : i32, i32
  }
  func.func @transform_5(%arg0: i32) -> (i32, i32, i32) {
    %c0_i32 = arith.constant 0 : i32
    %c0_i32_0 = arith.constant 0 : i32
    %c0_i32_1 = arith.constant 0 : i32
    return %arg0, %c0_i32, %c0_i32_0 : i32, i32, i32
  }
}

</mosaic_0001>

<bundles_post_ra>
// kernel: pla7_forward.2
= control target key start
LH: loop header
LB: loop body
LE: loop exit
PB: predicated region body
PF: predicated region fallthrough
CT: control target
= control target key end

     0   :  { %s694_s9 = smov 0   ;;  %s804_s0 = inlined_call_operand.vmem [shape: f32[2,120,256], index: 0, kind: input, shape index: {}]   ;;  %s805_s1 = inlined_call_operand.vmem [shape: bf16[120,120], index: 1, kind: input, shape index: {}]   ;;  %s806_s2 = inlined_call_operand.vmem [shape: bf16[2,120,256], index: 2, kind: output, shape index: {}]  }
   0x1 LB: > { %s579_s10 = sadd.s32 4294967295, %s676_s9   ;;  %p583_p0 = scmp.ge.s32.totalorder %s676_s9, 1  ;;  %s676_s9 = sphi %s694_s9, %s12_s9  }
   0x2   : > { %p112_p1 = scmp.lt.s32.totalorder %s676_s9, 3 }
   0x4   : > { %p113_p2 = pnand %p583_p0, %p112_p1 }
   0x5   : > { %p134_p3 = scmp.lt.s32.totalorder (!%p113_p2), %s579_s10, 1  ;;  %v678_v0 = vmov (!%p113_p2), 0   ;;  %vm269_vm0 = vcmask (!%p113_p2), 1043456   ;;  %v662_v48 = vld [vmem:[%s805_s1] sm:$0xff] (!%p113_p2)   ;;  %vm244_vm1 = vcmask (!%p113_p2), 982016   ;;  %v664_v50 = vld [vmem:[%s805_s1 + $0x8] sm:$0xff] (!%p113_p2)  }
   0x6   : > { %116 = sbr.rel (%p113_p2) target bundleno = 296 (0x128), region = 28  ;;  %308 = vmatprep.mubr.bf16.mxu0 (!%p113_p2), %v678_v0  ;;  %348 = vmatprep.mubr.bf16.mxu1 (!%p113_p2), %v678_v0  ;;  %v663_v49 = vld [vmem:[%s805_s1 + $0x20] sm:$0xff] (!%p113_p2)   ;;  %v665_v51 = vld [vmem:[%s805_s1 + $0x28] sm:$0xff] (!%p113_p2)   ;;  %v666_v52 = vld [vmem:[%s805_s1 + $0x10] sm:$0xff] (!%p113_p2)  }
   0x7   : > { %v667_v53 = vld [vmem:[%s805_s1 + $0x30] sm:$0xff] (!%p113_p2)   ;;  %v668_v54 = vld [vmem:[%s805_s1 + $0x18] sm:$0xff] (!%p113_p2)  }
   0x8   : > { %v669_v55 = vld [vmem:[%s805_s1 + $0x38] ss:$0 sps:$4 sm:$0xff] (!%p113_p2)  }
   0xd   : > { %s808_s10 = smov (!%p134_p3, %s579_s10), 1 }
   0xe   : > { %s651_s11 = smul.u32 240, %s808_s10 }
   0xf   : > { %s652_s3 = smul.u32 120, %s808_s10 }
  0x10   : > { %s710_s14 = scalar_lea.vmem %s804_s0, %s651_s11 }
  0x11   : > { %v161_v1 = vld [vmem:[%s710_s14 + $0x8] sm:$0xff]  ;;  %v163_v2 = vld [vmem:[%s710_s14 + $0x18] sm:$0xff]  ;;  %v160_v3 = vld [vmem:[%s710_s14] sm:$0xff]  ;;  %s784_s6 = scalar_lea.vmem %s806_s2, %s652_s3 }
  0x12   : > { %v191_v4 = vpack.c.bf16 %v163_v2, %v161_v1  ;;  %v162_v5 = vld [vmem:[%s710_s14 + $0x10] sm:$0xff]  ;;  %v165_v6 = vld [vmem:[%s710_s14 + $0x28] sm:$0xff]  ;;  %v167_v7 = vld [vmem:[%s710_s14 + $0x38] sm:$0xff] }
  0x13   : > { %v190_v8 = vpack.c.bf16 %v162_v5, %v160_v3  ;;  %v193_v9 = vpack.c.bf16 %v167_v7, %v165_v6  ;;  %v164_v10 = vld [vmem:[%s710_s14 + $0x20] sm:$0xff]  ;;  %v166_v11 = vld [vmem:[%s710_s14 + $0x30] sm:$0xff]  ;;  %v169_v12 = vld [vmem:[%s710_s14 + $0x48] sm:$0xff] }
  0x14   : > { %276 = vmatprep.subr.bf16.mxu0 %v191_v4  ;;  %635 = vmatprep.subr.bf16.mxu1 %v191_v4  ;;  %v171_v13 = vld [vmem:[%s710_s14 + $0x58] sm:$0xff]  ;;  %v192_v14 = vpack.c.bf16 %v166_v11, %v164_v10  ;;  %v168_v16 = vld [vmem:[%s710_s14 + $0x40] sm:$0xff]  ;;  %v170_v17 = vld [vmem:[%s710_s14 + $0x50] sm:$0xff] }
  0x15   : > { %277 = vmatpush1.bf16.msra.mxu0 %v190_v8  ;;  %643 = vmatpush1.bf16.msra.mxu1 %v190_v8  ;;  %v195_v15 = vpack.c.bf16 %v171_v13, %v169_v12  ;;  %v173_v18 = vld [vmem:[%s710_s14 + $0x68] sm:$0xff]  ;;  %v175_v19 = vld [vmem:[%s710_s14 + $0x78] sm:$0xff]  ;;  %v194_v20 = vpack.c.bf16 %v170_v17, %v168_v16  ;;  %v172_v22 = vld [vmem:[%s710_s14 + $0x60] sm:$0xff] }
  0x16   : > { %278 = vmatprep.subr.bf16.mxu0 %v193_v9  ;;  %636 = vmatprep.subr.bf16.mxu1 %v193_v9  ;;  %v197_v21 = vpack.c.bf16 %v175_v19, %v173_v18  ;;  %v174_v23 = vld [vmem:[%s710_s14 + $0x70] sm:$0xff]  ;;  %v177_v24 = vld [vmem:[%s710_s14 + $0x88] sm:$0xff]  ;;  %v179_v25 = vld [vmem:[%s710_s14 + $0x98] sm:$0xff] }
  0x17   : > { %v196_v26 = vpack.c.bf16 %v174_v23, %v172_v22  ;;  %v199_v27 = vpack.c.bf16 %v179_v25, %v177_v24  ;;  %v176_v28 = vld [vmem:[%s710_s14 + $0x80] sm:$0xff]  ;;  %v178_v29 = vld [vmem:[%s710_s14 + $0x90] sm:$0xff]  ;;  %v181_v30 = vld [vmem:[%s710_s14 + $0xa8] sm:$0xff] }
  0x18   : > { %v183_v31 = vld [vmem:[%s710_s14 + $0xb8] sm:$0xff]  ;;  %v198_v32 = vpack.c.bf16 %v178_v29, %v176_v28  ;;  %v180_v34 = vld [vmem:[%s710_s14 + $0xa0] sm:$0xff]  ;;  %v182_v35 = vld [vmem:[%s710_s14 + $0xb0] sm:$0xff] }
  0x19   : > { %279 = vmatpush1.bf16.msra.mxu0 %v192_v14  ;;  %644 = vmatpush1.bf16.msra.mxu1 %v192_v14  ;;  %v201_v33 = vpack.c.bf16 %v183_v31, %v181_v30  ;;  %v185_v36 = vld [vmem:[%s710_s14 + $0xc8] sm:$0xff]  ;;  %v187_v37 = vld [vmem:[%s710_s14 + $0xd8] sm:$0xff]  ;;  %v200_v38 = vpack.c.bf16 %v182_v35, %v180_v34  ;;  %v184_v40 = vld [vmem:[%s710_s14 + $0xc0] sm:$0xff] }
  0x1a   : > { %280 = vmatprep.subr.bf16.mxu0 %v195_v15  ;;  %637 = vmatprep.subr.bf16.mxu1 %v195_v15  ;;  %v203_v39 = vpack.c.bf16 %v187_v37, %v185_v36  ;;  %v186_v41 = vld [vmem:[%s710_s14 + $0xd0] sm:$0xff]  ;;  %v189_v42 = vld [vmem:[%s710_s14 + $0xe8] sm:$0xff]  ;;  %v188_v43 = vld [vmem:[%s710_s14 + $0xe0] sm:$0xff] }
  0x1b   : > { %v202_v44 = vpack.c.bf16 %v186_v41, %v184_v40  ;;  %v205_v45 = vpack.c.bf16 %v189_v42, %v189_v42  ;;  %v204_v46 = vpack.c.bf16 %v188_v43, %v188_v43 }
  0x1d   : > { %281 = vmatpush1.bf16.msra.mxu0 %v194_v20  ;;  %645 = vmatpush1.bf16.msra.mxu1 %v194_v20  ;;  %v271_v47 = vsel %vm269_vm0, %v204_v46, 0 }
  0x1e   : > { %282 = vmatprep.subr.bf16.mxu0 %v197_v21  ;;  %638 = vmatprep.subr.bf16.mxu1 %v197_v21 }
  0x21   : > { %283 = vmatpush1.bf16.msra.mxu0 %v196_v26  ;;  %646 = vmatpush1.bf16.msra.mxu1 %v196_v26 }
  0x22   : > { %284 = vmatprep.subr.bf16.mxu0 %v199_v27  ;;  %639 = vmatprep.subr.bf16.mxu1 %v199_v27 }
  0x25   : > { %285 = vmatpush1.bf16.msra.mxu0 %v198_v32  ;;  %647 = vmatpush1.bf16.msra.mxu1 %v198_v32 }
  0x26   : > { %286 = vmatprep.subr.bf16.mxu0 %v201_v33  ;;  %640 = vmatprep.subr.bf16.mxu1 %v201_v33 }
  0x29   : > { %287 = vmatpush1.bf16.msra.mxu0 %v200_v38  ;;  %648 = vmatpush1.bf16.msra.mxu1 %v200_v38 }
  0x2a   : > { %288 = vmatprep.subr.bf16.mxu0 %v203_v39  ;;  %641 = vmatprep.subr.bf16.mxu1 %v203_v39 }
  0x2d   : > { %289 = vmatpush1.bf16.msra.mxu0 %v202_v44  ;;  %649 = vmatpush1.bf16.msra.mxu1 %v202_v44 }
  0x2e   : > { %594 = vmatprep.subr.msk.bf16.mxu0 %vm269_vm0, %v205_v45  ;;  %642 = vmatprep.subr.msk.bf16.mxu1 %vm269_vm0, %v205_v45 }
  0x31   : > { %291 = vmatpush1.bf16.msra.mxu0 %v271_v47  ;;  %650 = vmatpush1.bf16.msra.mxu1 %v271_v47 }
  0x34   : > { %595 = vmatmul.mubr.msk.bf16.vlgmr.msra.gmra.mrb[0].mxu0 %vm244_vm1, %v662_v48  ;;  %599 = vmatmul.mubr.msk.bf16.vlgmr.msra.gmra.mrb[0].mxu1 %vm244_vm1, %v663_v49 }
  0x35   : > { %318 = vmatprep.mubr.bf16.mxu0 %v678_v0  ;;  %358 = vmatprep.mubr.bf16.mxu1 %v678_v0 }
  0x3c   : > { %596 = vmatmul.mubr.msk.bf16.gmra.mrb[4].mxu0 %vm244_vm1, %v664_v50  ;;  %600 = vmatmul.mubr.msk.bf16.gmra.mrb[4].mxu1 %vm244_vm1, %v665_v51 }
  0x3d   : > { %328 = vmatprep.mubr.bf16.mxu0 %v678_v0  ;;  %368 = vmatprep.mubr.bf16.mxu1 %v678_v0 }
  0x44   : > { %597 = vmatmul.mubr.msk.bf16.gmra.mrb[8].mxu0 %vm244_vm1, %v666_v52  ;;  %601 = vmatmul.mubr.msk.bf16.gmra.mrb[8].mxu1 %vm244_vm1, %v667_v53 }
  0x45   : > { %338 = vmatprep.mubr.bf16.mxu0 %v678_v0  ;;  %378 = vmatprep.mubr.bf16.mxu1 %v678_v0 }
  0x4c   : > { %598 = vmatmul.mubr.msk.bf16.gmra.mrb[12].mxu0 %vm244_vm1, %v668_v54  ;;  %602 = vmatmul.mubr.msk.bf16.gmra.mrb[12].mxu1 %vm244_vm1, %v669_v55 }
 0x107   : > { %v310_v56 = vpop.f32.mrb[0].mxu0  ;;  %v350_v57 = vpop.f32.mrb[0].mxu1 }
 0x108   : > { %v387_v58 = vmax.f32 %v310_v56, 0.0  ;;  %v403_v59 = vmax.f32 %v350_v57, 0.0  ;;  %v312_v60 = vpop.f32.mrb[1].mxu0  ;;  %v352_v61 = vpop.f32.mrb[1].mxu1 }
 0x109   : > { %v388_v62 = vmax.f32 %v312_v60, 0.0  ;;  %v404_v63 = vmax.f32 %v352_v61, 0.0  ;;  %v314_v0 = vpop.f32.mrb[2].mxu0  ;;  %v354_v1 = vpop.f32.mrb[2].mxu1 }
 0x10a   : > { %v389_v2 = vmax.f32 %v314_v0, 0.0  ;;  %v405_v3 = vmax.f32 %v354_v1, 0.0  ;;  %v316_v4 = vpop.f32.mrb[3].mxu0  ;;  %v356_v5 = vpop.f32.mrb[3].mxu1 }
 0x10b   : > { %v620_v6 = vpack.c.bf16 %v388_v62, %v387_v58  ;;  %v628_v7 = vpack.c.bf16 %v404_v63, %v403_v59  ;;  %v390_v8 = vmax.f32 %v316_v4, 0.0  ;;  %v406_v9 = vmax.f32 %v356_v5, 0.0 }
 0x10d   : > { %509 = vst [vmem:[%s784_s6] sm:$0xff] %v620_v6  ;;  %517 = vst [vmem:[%s784_s6 + $0x40] sm:$0xff] %v628_v7  ;;  %v621_v10 = vpack.c.bf16 %v390_v8, %v389_v2  ;;  %v629_v11 = vpack.c.bf16 %v406_v9, %v405_v3 }
 0x10f   : > { %510 = vst [vmem:[%s784_s6 + $0x8] sm:$0xff] %v621_v10  ;;  %518 = vst [vmem:[%s784_s6 + $0x48] sm:$0xff] %v629_v11  ;;  %v320_v12 = vpop.f32.mrb[4].mxu0  ;;  %v360_v13 = vpop.f32.mrb[4].mxu1 }
 0x110   : > { %v391_v14 = vmax.f32 %v320_v12, 0.0  ;;  %v407_v15 = vmax.f32 %v360_v13, 0.0  ;;  %v322_v16 = vpop.f32.mrb[5].mxu0  ;;  %v362_v17 = vpop.f32.mrb[5].mxu1 }
 0x111   : > { %v392_v18 = vmax.f32 %v322_v16, 0.0  ;;  %v408_v19 = vmax.f32 %v362_v17, 0.0  ;;  %v324_v20 = vpop.f32.mrb[6].mxu0  ;;  %v364_v21 = vpop.f32.mrb[6].mxu1 }
 0x112   : > { %v393_v22 = vmax.f32 %v324_v20, 0.0  ;;  %v409_v23 = vmax.f32 %v364_v21, 0.0  ;;  %v326_v24 = vpop.f32.mrb[7].mxu0  ;;  %v366_v25 = vpop.f32.mrb[7].mxu1 }
 0x113   : > { %v622_v26 = vpack.c.bf16 %v392_v18, %v391_v14  ;;  %v630_v27 = vpack.c.bf16 %v408_v19, %v407_v15  ;;  %v394_v28 = vmax.f32 %v326_v24, 0.0  ;;  %v410_v29 = vmax.f32 %v366_v25, 0.0 }
 0x115   : > { %511 = vst [vmem:[%s784_s6 + $0x10] sm:$0xff] %v622_v26  ;;  %519 = vst [vmem:[%s784_s6 + $0x50] sm:$0xff] %v630_v27  ;;  %v623_v30 = vpack.c.bf16 %v394_v28, %v393_v22  ;;  %v631_v31 = vpack.c.bf16 %v410_v29, %v409_v23 }
 0x117   : > { %512 = vst [vmem:[%s784_s6 + $0x18] sm:$0xff] %v623_v30  ;;  %520 = vst [vmem:[%s784_s6 + $0x58] sm:$0xff] %v631_v31  ;;  %v330_v32 = vpop.f32.mrb[8].mxu0  ;;  %v370_v33 = vpop.f32.mrb[8].mxu1 }
 0x118   : > { %v395_v34 = vmax.f32 %v330_v32, 0.0  ;;  %v411_v35 = vmax.f32 %v370_v33, 0.0  ;;  %v332_v36 = vpop.f32.mrb[9].mxu0  ;;  %v372_v37 = vpop.f32.mrb[9].mxu1 }
 0x119   : > { %v396_v38 = vmax.f32 %v332_v36, 0.0  ;;  %v412_v39 = vmax.f32 %v372_v37, 0.0  ;;  %v334_v40 = vpop.f32.mrb[10].mxu0  ;;  %v374_v41 = vpop.f32.mrb[10].mxu1 }
 0x11a   : > { %v397_v42 = vmax.f32 %v334_v40, 0.0  ;;  %v413_v43 = vmax.f32 %v374_v41, 0.0  ;;  %v336_v44 = vpop.f32.mrb[11].mxu0  ;;  %v376_v45 = vpop.f32.mrb[11].mxu1 }
 0x11b   : > { %v624_v46 = vpack.c.bf16 %v396_v38, %v395_v34  ;;  %v632_v47 = vpack.c.bf16 %v412_v39, %v411_v35  ;;  %v398_v48 = vmax.f32 %v336_v44, 0.0  ;;  %v414_v49 = vmax.f32 %v376_v45, 0.0 }
 0x11d   : > { %513 = vst [vmem:[%s784_s6 + $0x20] sm:$0xff] %v624_v46  ;;  %521 = vst [vmem:[%s784_s6 + $0x60] sm:$0xff] %v632_v47  ;;  %v625_v50 = vpack.c.bf16 %v398_v48, %v397_v42  ;;  %v633_v51 = vpack.c.bf16 %v414_v49, %v413_v43 }
 0x11f   : > { %514 = vst [vmem:[%s784_s6 + $0x28] sm:$0xff] %v625_v50  ;;  %522 = vst [vmem:[%s784_s6 + $0x68] sm:$0xff] %v633_v51  ;;  %v340_v52 = vpop.f32.mrb[12].mxu0  ;;  %v380_v53 = vpop.f32.mrb[12].mxu1 }
 0x120   : > { %v399_v54 = vmax.f32 %v340_v52, 0.0  ;;  %v415_v55 = vmax.f32 %v380_v53, 0.0  ;;  %v342_v56 = vpop.f32.mrb[13].mxu0  ;;  %v382_v57 = vpop.f32.mrb[13].mxu1 }
 0x121   : > { %v400_v58 = vmax.f32 %v342_v56, 0.0  ;;  %v416_v59 = vmax.f32 %v382_v57, 0.0  ;;  %v344_v60 = vpop.f32.mrb[14].mxu0  ;;  %v384_v61 = vpop.f32.mrb[14].mxu1 }
 0x122   : > { %v401_v62 = vmax.f32 %v344_v60, 0.0  ;;  %v346_v63 = vpop.f32.mrb[15].mxu0  ;;  %v385_v0 = vpop.f32.mrb[15].mxu1 }
 0x123   : > { %v626_v1 = vpack.c.bf16 %v400_v58, %v399_v54  ;;  %v634_v2 = vpack.c.bf16 %v416_v59, %v415_v55  ;;  %v402_v3 = vmax.f32 %v346_v63, 0.0 }
 0x125   : > { %515 = vst [vmem:[%s784_s6 + $0x30] sm:$0xff] %v626_v1  ;;  %523 = vst [vmem:[%s784_s6 + $0x70] sm:$0xff] %v634_v2  ;;  %v627_v4 = vpack.c.bf16 %v402_v3, %v401_v62 }
 0x127   : > { %516 = vst [vmem:[%s784_s6 + $0x38] sm:$0xff] %v627_v4 }
 0x128 PF: > { %s12_s9 = sadd.s32 1, %s676_s9  }
 0x129   : > { %p9_p4 = scmp.ge.s32.totalorder %s12_s9, 4  }
 0x12b   :  { %11 = sbr.rel (!%p9_p4) target bundleno = 1 (0x1), region = 58 }

// kernel: pla7_forward.3
= control target key start
LH: loop header
LB: loop body
LE: loop exit
PB: predicated region body
PF: predicated region fallthrough
CT: control target
= control target key end

     0   :  { %s1487_s20 = smov 0   ;;  %s1861_s0 = inlined_call_operand.<no memory space> [shape: f32[1], index: 0, kind: input, shape index: {}]   ;;  %s1862_s1 = inlined_call_operand.vmem [shape: f32[2,120,256], index: 1, kind: input, shape index: {}]   ;;  %s1863_s2 = inlined_call_operand.vmem [shape: bf16[2,120,256], index: 2, kind: input, shape index: {}]   ;;  %s1864_s3 = inlined_call_operand.vmem [shape: bf16[2,256,120], index: 3, kind: input, shape index: {}]   ;;  %s1865_s4 = inlined_call_operand.vmem [shape: bf16[40,120], index: 4, kind: input, shape index: {}]   ;;  %s1866_s5 = inlined_call_operand.vmem [shape: f32[2,40,256], index: 5, kind: output, shape index: {}]  }
   0x1   :  { %10 = sst [smem:[#allocation2]] %s1861_s0 }
   0x2 LB: > { %s1190_s21 = sadd.s32 4294967295, %s1451_s20   ;;  %p1194_p0 = scmp.ge.s32.totalorder %s1451_s20, 1  ;;  %s1451_s20 = sphi %s1487_s20, %s16_s20  }
   0x3   : > { %p208_p1 = scmp.lt.s32.totalorder %s1451_s20, 3 }
   0x5   : > { %p209_p2 = pnand %p1194_p0, %p208_p1 }
   0x6   : > { %p246_p3 = scmp.lt.s32.totalorder (!%p209_p2), %s1190_s21, 1  ;;  %vm613_vm0 = vcmask (!%p209_p2), 982016   ;;  %vm811_vm1 = vcmask (!%p209_p2), 1043456   ;;  %s929_s29 = sld [smem:[#allocation2]] (!%p209_p2) }
   0x7   : > { %212 = sbr.rel (%p209_p2) target bundleno = 1088 (0x440), region = 40 }
   0xe   : > { %s1868_s21 = smov (!%p246_p3, %s1190_s21), 1 }
   0xf   : > { %s1250_s0 = sshll.u32 %s1868_s21, 7  ;;  %s1332_s25 = smul.u32 120, %s1868_s21 }
  0x10   : > { %s1501_s24 = scalar_lea.vmem %s1864_s3, %s1250_s0  ;;  %s1331_s30 = smul.u32 240, %s1868_s21 }
  0x11   : > { %v1343_v0 = vld [vmem:[%s1501_s24 + $0x40] sm:$0xff]   ;;  %v1345_v2 = vld [vmem:[%s1501_s24 + $0x48] sm:$0xff]   ;;  %v1347_v4 = vld [vmem:[%s1501_s24 + $0x50] sm:$0xff]   ;;  %s1516_s28 = scalar_lea.vmem %s1863_s2, %s1332_s25  ;;  %s1333_s15 = smul.u32 80, %s1868_s21 }
  0x12   : > { %v1344_v1 = vld [vmem:[%s1501_s24] sm:$0xff]   ;;  %1251 = vmatprep.subr.bf16.mxu0 %v1343_v0  ;;  %v1346_v3 = vld [vmem:[%s1501_s24 + $0x8] sm:$0xff]   ;;  %v1348_v5 = vld [vmem:[%s1501_s24 + $0x10] sm:$0xff]   ;;  %s1724_s8 = scalar_lea.vmem %s1862_s1, %s1331_s30 }
  0x13   : > { %1252 = vmatpush3.bf16.msra.mxu0 %v1344_v1  ;;  %v1349_v6 = vld [vmem:[%s1501_s24 + $0x58] sm:$0xff]   ;;  %v1351_v8 = vld [vmem:[%s1501_s24 + $0x60] sm:$0xff]   ;;  %v1353_v10 = vld [vmem:[%s1501_s24 + $0x68] sm:$0xff]   ;;  %s1836_s18 = scalar_lea.vmem %s1866_s5, %s1333_s15 }
  0x14   : > { %1253 = vmatprep.subr.bf16.mxu0 %v1345_v2  ;;  %v1350_v7 = vld [vmem:[%s1501_s24 + $0x18] sm:$0xff]   ;;  %v1352_v9 = vld [vmem:[%s1501_s24 + $0x20] sm:$0xff]   ;;  %v1354_v12 = vld [vmem:[%s1501_s24 + $0x28] sm:$0xff]  }
  0x15   : > { %v1361_v11 = vld [vmem:[%s1516_s28 + $0x4] ss:$8 sps:$4 sm:$0xff]   ;;  %v1355_v13 = vld [vmem:[%s1501_s24 + $0x70] sm:$0xff]   ;;  %v1359_v14 = vld [vmem:[%s1516_s28] ss:$8 sps:$4 sm:$0xff]  }
  0x16   : > { %549 = vmatprep.mubr.bf16.mxu0 %v1361_v11  ;;  %v1362_v15 = vld [vmem:[%s1516_s28 + $0x14] ss:$8 sps:$4 sm:$0xff]   ;;  %818 = vmatprep.subr.bf16.mxu1 %v1361_v11  ;;  %v1364_v18 = vld [vmem:[%s1516_s28 + $0x10] ss:$8 sps:$4 sm:$0xff]   ;;  %v1365_v19 = vld [vmem:[%s1516_s28 + $0x24] ss:$8 sps:$4 sm:$0xff]  }
  0x17   : > { %1254 = vmatpush3.bf16.msra.mxu0 %v1346_v3  ;;  %819 = vmatpush1.bf16.msra.mxu1 %v1359_v14  ;;  %v1356_v16 = vld [vmem:[%s1501_s24 + $0x30] sm:$0xff]   ;;  %v1357_v17 = vld [vmem:[%s1501_s24 + $0x78] sm:$0xff]   ;;  %v1367_v21 = vld [vmem:[%s1516_s28 + $0x20] ss:$8 sps:$4 sm:$0xff]  }
  0x18   : > { %1255 = vmatprep.subr.bf16.mxu0 %v1347_v4  ;;  %820 = vmatprep.subr.bf16.mxu1 %v1362_v15  ;;  %v1358_v20 = vld [vmem:[%s1501_s24 + $0x38] sm:$0xff]   ;;  %v1371_v24 = vld [vmem:[%s1516_s28 + $0x44] ss:$8 sps:$4 sm:$0xff]   ;;  %v1373_v25 = vld [vmem:[%s1516_s28 + $0x40] ss:$8 sps:$4 sm:$0xff]  }
  0x19   : > { %v1368_v22 = vld [vmem:[%s1516_s28 + $0x34] ss:$8 sps:$4 sm:$0xff]   ;;  %v1370_v23 = vld [vmem:[%s1516_s28 + $0x30] ss:$8 sps:$4 sm:$0xff]   ;;  %v1377_v28 = vld [vmem:[%s1516_s28 + $0x64] ss:$8 sps:$4 sm:$0xff]  }
  0x1a   : > { %v1374_v26 = vld [vmem:[%s1516_s28 + $0x54] ss:$8 sps:$4 sm:$0xff]   ;;  %v1376_v27 = vld [vmem:[%s1516_s28 + $0x50] ss:$8 sps:$4 sm:$0xff]   ;;  %v1379_v29 = vld [vmem:[%s1516_s28 + $0x60] ss:$8 sps:$4 sm:$0xff]  }
  0x1b   : > { %1256 = vmatpush3.bf16.msra.mxu0 %v1348_v5  ;;  %821 = vmatpush1.bf16.msra.mxu1 %v1364_v18  ;;  %v311_v30 = vld [vmem:[%s1516_s28 + $0x70] sm:$0xff] }
  0x1c   : > { %1257 = vmatprep.subr.bf16.mxu0 %v1349_v6  ;;  %822 = vmatprep.subr.bf16.mxu1 %v1365_v19  ;;  %v1540_v31 = vcombine.high %v311_v30, %v311_v30  ;;  %v1543_v32 = vcombine.low %v311_v30, %v311_v30 }
  0x1f   : > { %1258 = vmatpush3.bf16.msra.mxu0 %v1350_v7  ;;  %823 = vmatpush1.bf16.msra.mxu1 %v1367_v21 }
  0x20   : > { %1259 = vmatprep.subr.bf16.mxu0 %v1351_v8  ;;  %824 = vmatprep.subr.bf16.mxu1 %v1368_v22 }
  0x23   : > { %1260 = vmatpush3.bf16.msra.mxu0 %v1352_v9  ;;  %825 = vmatpush1.bf16.msra.mxu1 %v1370_v23 }
  0x24   : > { %1261 = vmatprep.subr.bf16.mxu0 %v1353_v10  ;;  %826 = vmatprep.subr.bf16.mxu1 %v1371_v24 }
  0x27   : > { %1262 = vmatpush3.bf16.msra.mxu0 %v1354_v12  ;;  %827 = vmatpush1.bf16.msra.mxu1 %v1373_v25 }
  0x28   : > { %1263 = vmatprep.subr.bf16.mxu0 %v1355_v13  ;;  %828 = vmatprep.subr.bf16.mxu1 %v1374_v26 }
  0x2b   : > { %1264 = vmatpush3.bf16.msra.mxu0 %v1356_v16  ;;  %829 = vmatpush1.bf16.msra.mxu1 %v1376_v27 }
  0x2c   : > { %1265 = vmatprep.subr.bf16.mxu0 %v1357_v17  ;;  %830 = vmatprep.subr.bf16.mxu1 %v1377_v28 }
  0x2f   : > { %1266 = vmatpush3.bf16.msra.mxu0 %v1358_v20  ;;  %831 = vmatpush1.bf16.msra.mxu1 %v1379_v29 }
  0x30   : > { %1232 = vmatprep.subr.msk.bf16.mxu1 %vm811_vm1, %v1540_v31 }
  0x32   : > { %550 = vmatmul.mubr.bf16.vlgmr.msra.gmra.mrb[0].mxu0 %v1359_v14 }
  0x33   : > { %557 = vmatprep.mubr.bf16.mxu0 %v1362_v15 }
  0x3a   : > { %558 = vmatmul.mubr.bf16.gmra.mrb[4].mxu0 %v1364_v18 }
  0x3b   : > { %565 = vmatprep.mubr.bf16.mxu0 %v1365_v19 }
  0x42   : > { %566 = vmatmul.mubr.bf16.gmra.mrb[8].mxu0 %v1367_v21 }
  0x43   : > { %573 = vmatprep.mubr.bf16.mxu0 %v1368_v22 }
  0x4a   : > { %574 = vmatmul.mubr.bf16.gmra.mrb[12].mxu0 %v1370_v23 }
  0x4b   : > { %581 = vmatprep.mubr.bf16.mxu0 %v1371_v24 }
  0x52   : > { %582 = vmatmul.mubr.bf16.gmra.mrb[16].mxu0 %v1373_v25 }
  0x53   : > { %589 = vmatprep.mubr.bf16.mxu0 %v1374_v26 }
  0x5a   : > { %590 = vmatmul.mubr.bf16.gmra.mrb[20].mxu0 %v1376_v27 }
  0x5b   : > { %597 = vmatprep.mubr.bf16.mxu0 %v1377_v28 }
  0x62   : > { %598 = vmatmul.mubr.bf16.gmra.mrb[24].mxu0 %v1379_v29 }
  0x63   : > { %605 = vmatprep.mubr.bf16.mxu0 %v1540_v31 }
  0x6a   : > { %606 = vmatmul.mubr.bf16.gmra.mrb[28].mxu0 %v1543_v32 }
 0x105   : > { %v1267_v33 = vpop.f32.mrb[0].mxu0 }
 0x106   : > { %v1268_v34 = vpop.f32.mrb[1].mxu0 }
 0x107   : > { %v1546_v35 = vadd.f32 %v1268_v34, %v1267_v33  ;;  %v1270_v36 = vpop.f32.mrb[2].mxu0 }
 0x108   : > { %v1271_v37 = vpop.f32.mrb[3].mxu0 }
 0x109   : > { %v1548_v38 = vadd.f32 %v1271_v37, %v1270_v36  ;;  %v614_v39 = vsel %vm613_vm0, %v1546_v35, -inf }
 0x10a   : > { %615 = vmax.xlane.f32.xlu0 %v614_v39 }
 0x10b   : > { %v617_v41 = vsel %vm613_vm0, %v1548_v38, -inf }
 0x10d   : > { %v1273_v40 = vpop.f32.mrb[4].mxu0 }
 0x10e   : > { %v1274_v42 = vpop.f32.mrb[5].mxu0  ;;  %618 = vmax.xlane.f32.xlu0 %v617_v41 }
 0x10f   : > { %v1554_v43 = vadd.f32 %v1274_v42, %v1273_v40  ;;  %v1276_v44 = vpop.f32.mrb[6].mxu0 }
 0x110   : > { %v1277_v45 = vpop.f32.mrb[7].mxu0 }
 0x111   : > { %v1556_v46 = vadd.f32 %v1277_v45, %v1276_v44  ;;  %v620_v47 = vsel %vm613_vm0, %v1554_v43, -inf }
 0x112   : > { %621 = vmax.xlane.f32.xlu1 %v620_v47 }
 0x113   : > { %v623_v49 = vsel %vm613_vm0, %v1556_v46, -inf }
 0x115   : > { %v1279_v48 = vpop.f32.mrb[8].mxu0 }
 0x116   : > { %v1280_v50 = vpop.f32.mrb[9].mxu0  ;;  %624 = vmax.xlane.f32.xlu1 %v623_v49 }
 0x117   : > { %v1562_v51 = vadd.f32 %v1280_v50, %v1279_v48  ;;  %v1282_v52 = vpop.f32.mrb[10].mxu0 }
 0x118   : > { %v1283_v53 = vpop.f32.mrb[11].mxu0 }
 0x119   : > { %v1564_v54 = vadd.f32 %v1283_v53, %v1282_v52  ;;  %v626_v55 = vsel %vm613_vm0, %v1562_v51, -inf }
 0x11a   : > { %627 = vmax.xlane.f32.xlu0 %v626_v55 }
 0x11b   : > { %v629_v56 = vsel %vm613_vm0, %v1564_v54, -inf }
 0x11c   : > { %630 = vmax.xlane.f32.xlu1 %v629_v56 }
 0x11d   : > { %v1285_v57 = vpop.f32.mrb[12].mxu0 }
 0x11e   : > { %v1286_v58 = vpop.f32.mrb[13].mxu0 }
 0x11f   : > { %v1570_v59 = vadd.f32 %v1286_v58, %v1285_v57  ;;  %v1288_v60 = vpop.f32.mrb[14].mxu0 }
 0x120   : > { %v1289_v61 = vpop.f32.mrb[15].mxu0 }
 0x121   : > { %v1572_v62 = vadd.f32 %v1289_v61, %v1288_v60  ;;  %v632_v63 = vsel %vm613_vm0, %v1570_v59, -inf }
 0x122   : > { %633 = vmax.xlane.f32.xlu0 %v632_v63 }
 0x123   : > { %v635_v0 = vsel %vm613_vm0, %v1572_v62, -inf }
 0x124   : > { %636 = vmax.xlane.f32.xlu1 %v635_v0 }
 0x125   : > { %v1291_v1 = vpop.f32.mrb[16].mxu0 }
 0x126   : > { %v1292_v2 = vpop.f32.mrb[17].mxu0 }
 0x127   : > { %v1578_v3 = vadd.f32 %v1292_v2, %v1291_v1  ;;  %v1294_v4 = vpop.f32.mrb[18].mxu0 }
 0x128   : > { %v1295_v5 = vpop.f32.mrb[19].mxu0 }
 0x129   : > { %v1580_v6 = vadd.f32 %v1295_v5, %v1294_v4  ;;  %v638_v7 = vsel %vm613_vm0, %v1578_v3, -inf }
 0x12a   : > { %639 = vmax.xlane.f32.xlu0 %v638_v7 }
 0x12b   : > { %v641_v8 = vsel %vm613_vm0, %v1580_v6, -inf }
 0x12c   : > { %642 = vmax.xlane.f32.xlu1 %v641_v8 }
 0x12d   : > { %v1297_v9 = vpop.f32.mrb[20].mxu0 }
 0x12e   : > { %v1298_v10 = vpop.f32.mrb[21].mxu0 }
 0x12f   : > { %v1586_v11 = vadd.f32 %v1298_v10, %v1297_v9  ;;  %v1300_v12 = vpop.f32.mrb[22].mxu0 }
 0x130   : > { %v1301_v13 = vpop.f32.mrb[23].mxu0 }
 0x131   : > { %v1588_v14 = vadd.f32 %v1301_v13, %v1300_v12  ;;  %v644_v15 = vsel %vm613_vm0, %v1586_v11, -inf }
 0x132   : > { %645 = vmax.xlane.f32.xlu0 %v644_v15 }
 0x133   : > { %v647_v16 = vsel %vm613_vm0, %v1588_v14, -inf }
 0x134   : > { %648 = vmax.xlane.f32.xlu1 %v647_v16 }
 0x135   : > { %v1303_v17 = vpop.f32.mrb[24].mxu0 }
 0x136   : > { %v1304_v18 = vpop.f32.mrb[25].mxu0 }
 0x137   : > { %v1594_v19 = vadd.f32 %v1304_v18, %v1303_v17  ;;  %v1306_v20 = vpop.f32.mrb[26].mxu0 }
 0x138   : > { %v1307_v21 = vpop.f32.mrb[27].mxu0 }
 0x139   : > { %v1596_v22 = vadd.f32 %v1307_v21, %v1306_v20  ;;  %v650_v23 = vsel %vm613_vm0, %v1594_v19, -inf }
 0x13a   : > { %651 = vmax.xlane.f32.xlu0 %v650_v23 }
 0x13b   : > { %v653_v24 = vsel %vm613_vm0, %v1596_v22, -inf }
 0x13c   : > { %654 = vmax.xlane.f32.xlu1 %v653_v24 }
 0x13d   : > { %v1309_v25 = vpop.f32.mrb[28].mxu0 }
 0x13e   : > { %v1310_v26 = vpop.f32.mrb[29].mxu0 }
 0x13f   : > { %v1602_v27 = vadd.f32 %v1310_v26, %v1309_v25  ;;  %v1312_v28 = vpop.f32.mrb[30].mxu0  ;;  %v813_v25 = vsel %vm811_vm1, %v1543_v32, 0 }
 0x140   : > { %v1313_v29 = vpop.f32.mrb[31].mxu0  ;;  %833 = vmatpush1.bf16.msra.mxu1 %v813_v25 }
 0x141   : > { %v656_v30 = vsel %vm613_vm0, %v1602_v27, -inf }
 0x142   : > { %657 = vmax.xlane.f32.xlu0 %v656_v30  ;;  %v1453_v30 = vmov 0  }
 0x143   : > { %850 = vmatprep.mubr.bf16.mxu1 %v1453_v30  ;;  %1072 = vmatprep.mubr.bf16.mxu0 %v1453_v30 }
 0x197   : > { %v616_v33 = vpop.xlane.xlu0 %615 }
 0x198   : > { %v659_v34 = vsub.f32 %v1546_v35, %v616_v33 }
 0x19a   : > { %v674_v36 = vmul.f32 1.442695, %v659_v34 }
 0x19b   : > { %v619_v37 = vpop.xlane.xlu0 %618 }
 0x19c   : > { %1385 = vpow2.f32 %v674_v36  ;;  %v660_v39 = vsub.f32 %v1548_v38, %v619_v37 }
 0x19e   : > { %v676_v40 = vmul.f32 1.442695, %v660_v39 }
 0x19f   : > { %v622_v41 = vpop.xlane.xlu1 %621 }
 0x1a0   : > { %1387 = vpow2.f32 %v676_v40  ;;  %v661_v42 = vsub.f32 %v1554_v43, %v622_v41 }
 0x1a2   : > { %v678_v44 = vmul.f32 1.442695, %v661_v42 }
 0x1a3   : > { %v625_v45 = vpop.xlane.xlu1 %624 }
 0x1a4   : > { %1389 = vpow2.f32 %v678_v44  ;;  %v662_v47 = vsub.f32 %v1556_v46, %v625_v45 }
 0x1a6   : > { %v1610_v48 = vpop.eup %1385  ;;  %v680_v49 = vmul.f32 1.442695, %v662_v47 }
 0x1a7   : > { %v628_v50 = vpop.xlane.xlu0 %627  ;;  %v704_v35 = vsel %vm613_vm0, %v1610_v48, 0.0 }
 0x1a8   : > { %1391 = vpow2.f32 %v680_v49  ;;  %v663_v38 = vsub.f32 %v1562_v51, %v628_v50  ;;  %705 = vadd.xlane.f32.xlu1 %v704_v35 }
 0x1a9   : > { %v631_v52 = vpop.xlane.xlu1 %630 }
 0x1aa   : > { %v1615_v53 = vpop.eup %1387  ;;  %v682_v43 = vmul.f32 1.442695, %v663_v38  ;;  %v664_v55 = vsub.f32 %v1564_v54, %v631_v52 }
 0x1ab   : > { %v707_v46 = vsel %vm613_vm0, %v1615_v53, 0.0 }
 0x1ac   : > { %1393 = vpow2.f32 %v682_v43  ;;  %v684_v56 = vmul.f32 1.442695, %v664_v55  ;;  %708 = vadd.xlane.f32.xlu0 %v707_v46 }
 0x1ae   : > { %v1620_v57 = vpop.eup %1389  ;;  %1395 = vpow2.f32 %v684_v56 }
 0x1af   : > { %v634_v58 = vpop.xlane.xlu0 %633  ;;  %v710_v51 = vsel %vm613_vm0, %v1620_v57, 0.0 }
 0x1b0   : > { %v665_v60 = vsub.f32 %v1570_v59, %v634_v58  ;;  %711 = vadd.xlane.f32.xlu1 %v710_v51 }
 0x1b1   : > { %v637_v61 = vpop.xlane.xlu1 %636 }
 0x1b2   : > { %v1625_v63 = vpop.eup %1391  ;;  %v686_v54 = vmul.f32 1.442695, %v665_v60  ;;  %v666_v0 = vsub.f32 %v1572_v62, %v637_v61 }
 0x1b3   : > { %v713_v1 = vsel %vm613_vm0, %v1625_v63, 0.0 }
 0x1b4   : > { %1397 = vpow2.f32 %v686_v54  ;;  %v688_v2 = vmul.f32 1.442695, %v666_v0  ;;  %714 = vadd.xlane.f32.xlu0 %v713_v1 }
 0x1b6   : > { %v1630_v4 = vpop.eup %1393  ;;  %1399 = vpow2.f32 %v688_v2 }
 0x1b7   : > { %v640_v5 = vpop.xlane.xlu0 %639  ;;  %v716_v59 = vsel %vm613_vm0, %v1630_v4, 0.0 }
 0x1b8   : > { %v1634_v7 = vpop.eup %1395  ;;  %v667_v8 = vsub.f32 %v1578_v3, %v640_v5  ;;  %717 = vadd.xlane.f32.xlu1 %v716_v59 }
 0x1b9   : > { %v643_v9 = vpop.xlane.xlu1 %642  ;;  %v719_v62 = vsel %vm613_vm0, %v1634_v7, 0.0 }
 0x1ba   : > { %v690_v10 = vmul.f32 1.442695, %v667_v8  ;;  %v668_v12 = vsub.f32 %v1580_v6, %v643_v9  ;;  %720 = vadd.xlane.f32.xlu0 %v719_v62 }
 0x1bc   : > { %1401 = vpow2.f32 %v690_v10  ;;  %v692_v13 = vmul.f32 1.442695, %v668_v12 }
 0x1be   : > { %v1640_v15 = vpop.eup %1397  ;;  %1403 = vpow2.f32 %v692_v13 }
 0x1bf   : > { %v646_v16 = vpop.xlane.xlu0 %645  ;;  %v722_v17 = vsel %vm613_vm0, %v1640_v15, 0.0 }
 0x1c0   : > { %v1644_v18 = vpop.eup %1399  ;;  %v669_v3 = vsub.f32 %v1586_v11, %v646_v16  ;;  %723 = vadd.xlane.f32.xlu1 %v722_v17 }
 0x1c1   : > { %v649_v20 = vpop.xlane.xlu1 %648  ;;  %v725_v21 = vsel %vm613_vm0, %v1644_v18, 0.0 }
 0x1c2   : > { %v694_v6 = vmul.f32 1.442695, %v669_v3  ;;  %v670_v23 = vsub.f32 %v1588_v14, %v649_v20  ;;  %726 = vadd.xlane.f32.xlu0 %v725_v21 }
 0x1c4   : > { %1405 = vpow2.f32 %v694_v6  ;;  %v696_v24 = vmul.f32 1.442695, %v670_v23 }
 0x1c6   : > { %v1654_v26 = vpop.eup %1401  ;;  %1407 = vpow2.f32 %v696_v24 }
 0x1c7   : > { %v652_v11 = vpop.xlane.xlu0 %651  ;;  %v728_v28 = vsel %vm613_vm0, %v1654_v26, 0.0 }
 0x1c8   : > { %v1658_v29 = vpop.eup %1403  ;;  %v671_v14 = vsub.f32 %v1594_v19, %v652_v11  ;;  %729 = vadd.xlane.f32.xlu1 %v728_v28 }
 0x1c9   : > { %v655_v31 = vpop.xlane.xlu1 %654  ;;  %v731_v32 = vsel %vm613_vm0, %v1658_v29, 0.0 }
 0x1ca   : > { %v698_v33 = vmul.f32 1.442695, %v671_v14  ;;  %v672_v34 = vsub.f32 %v1596_v22, %v655_v31  ;;  %732 = vadd.xlane.f32.xlu0 %v731_v32 }
 0x1cc   : > { %1409 = vpow2.f32 %v698_v33  ;;  %v700_v36 = vmul.f32 1.442695, %v672_v34 }
 0x1ce   : > { %v1666_v37 = vpop.eup %1405  ;;  %1411 = vpow2.f32 %v700_v36 }
 0x1cf   : > { %v658_v19 = vpop.xlane.xlu0 %657  ;;  %v734_v39 = vsel %vm613_vm0, %v1666_v37, 0.0 }
 0x1d0   : > { %v1670_v40 = vpop.eup %1407  ;;  %v673_v41 = vsub.f32 %v1602_v27, %v658_v19  ;;  %735 = vadd.xlane.f32.xlu1 %v734_v39 }
 0x1d1   : > { %v737_v42 = vsel %vm613_vm0, %v1670_v40, 0.0 }
 0x1d2   : > { %v702_v44 = vmul.f32 1.442695, %v673_v41  ;;  %738 = vadd.xlane.f32.xlu0 %v737_v42 }
 0x1d4   : > { %1413 = vpow2.f32 %v702_v44 }
 0x1d6   : > { %v1675_v22 = vpop.eup %1409 }
 0x1d7   : > { %v740_v45 = vsel %vm613_vm0, %v1675_v22, 0.0 }
 0x1d8   : > { %v1679_v47 = vpop.eup %1411  ;;  %741 = vadd.xlane.f32.xlu1 %v740_v45 }
 0x1d9   : > { %v743_v49 = vsel %vm613_vm0, %v1679_v47, 0.0 }
 0x1da   : > { %744 = vadd.xlane.f32.xlu0 %v743_v49 }
 0x1de   : > { %v1683_v27 = vpop.eup %1413 }
 0x1df   : > { %v746_v50 = vsel %vm613_vm0, %v1683_v27, 0.0 }
 0x1e0   : > { %747 = vadd.xlane.f32.xlu1 %v746_v50 }
 0x235   : > { %v706_v35 = vpop.xlane.xlu1 %705 }
 0x236   : > { %1415 = vrcp.f32 %v706_v35  ;;  %v1739_v35 = vld [vmem:[%s1724_s8 + $0x18] sm:$0xff] }
 0x239   : > { %v709_v38 = vpop.xlane.xlu0 %708 }
 0x23a   : > { %1417 = vrcp.f32 %v709_v38 }
 0x23d   : > { %v712_v52 = vpop.xlane.xlu1 %711 }
 0x23e   : > { %1419 = vrcp.f32 %v712_v52 }
 0x240   : > { %v1416_v55 = vpop.eup %1415 }
 0x241   : > { %v715_v43 = vpop.xlane.xlu0 %714  ;;  %v764_v58 = vmul.f32 %v1416_v55, %v1610_v48 }
 0x242   : > { %1421 = vrcp.f32 %v715_v43 }
 0x244   : > { %v1418_v46 = vpop.eup %1417 }
 0x245   : > { %v718_v56 = vpop.xlane.xlu1 %717  ;;  %v765_v51 = vmul.f32 %v1418_v46, %v1615_v53 }
 0x246   : > { %1423 = vrcp.f32 %v718_v56 }
 0x247   : > { %v721_v60 = vpop.xlane.xlu0 %720  ;;  %v779_v61 = vpack.c.bf16 %v765_v51, %v764_v58 }
 0x248   : > { %1425 = vrcp.f32 %v721_v60  ;;  %v1420_v54 = vpop.eup %1419 }
 0x249   : > { %1233 = vmatmul.mubr.msk.bf16.vlgmr.msra.gmra.mrb[0].mxu1 %vm613_vm0, %v779_v61  ;;  %v766_v2 = vmul.f32 %v1420_v54, %v1620_v57 }
 0x24a   : > { %860 = vmatprep.mubr.bf16.mxu1 %v1453_v30 }
 0x24c   : > { %v1422_v0 = vpop.eup %1421 }
 0x24d   : > { %v724_v1 = vpop.xlane.xlu1 %723  ;;  %v767_v5 = vmul.f32 %v1422_v0, %v1625_v63  ;;  %v1748_v0 = vld [vmem:[%s1724_s8 + $0x20] sm:$0xff] }
 0x24e   : > { %1427 = vrcp.f32 %v724_v1 }
 0x24f   : > { %v727_v59 = vpop.xlane.xlu0 %726  ;;  %v780_v48 = vpack.c.bf16 %v767_v5, %v766_v2  ;;  %v1752_v2 = vld [vmem:[%s1724_s8 + $0x30] sm:$0xff] }
 0x250   : > { %1429 = vrcp.f32 %v727_v59  ;;  %v1424_v53 = vpop.eup %1423  ;;  %v1755_v59 = vld [vmem:[%s1724_s8 + $0x28] sm:$0xff] }
 0x251   : > { %1234 = vmatmul.mubr.msk.bf16.gmra.mrb[4].mxu1 %vm613_vm0, %v780_v48  ;;  %v768_v10 = vmul.f32 %v1424_v53, %v1630_v4  ;;  %v1759_v53 = vld [vmem:[%s1724_s8 + $0x38] sm:$0xff] }
 0x252   : > { %v1426_v8 = vpop.eup %1425  ;;  %870 = vmatprep.mubr.bf16.mxu1 %v1453_v30 }
 0x253   : > { %v769_v9 = vmul.f32 %v1426_v8, %v1634_v7 }
 0x255   : > { %v730_v62 = vpop.xlane.xlu1 %729  ;;  %v781_v57 = vpack.c.bf16 %v769_v9, %v768_v10 }
 0x256   : > { %1431 = vrcp.f32 %v730_v62 }
 0x257   : > { %v733_v12 = vpop.xlane.xlu0 %732 }
 0x258   : > { %1433 = vrcp.f32 %v733_v12  ;;  %v1428_v63 = vpop.eup %1427 }
 0x259   : > { %1235 = vmatmul.mubr.msk.bf16.gmra.mrb[8].mxu1 %vm613_vm0, %v781_v57  ;;  %v770_v3 = vmul.f32 %v1428_v63, %v1640_v15 }
 0x25a   : > { %v1430_v13 = vpop.eup %1429  ;;  %880 = vmatprep.mubr.bf16.mxu1 %v1453_v30 }
 0x25b   : > { %v771_v16 = vmul.f32 %v1430_v13, %v1644_v18 }
 0x25d   : > { %v736_v17 = vpop.xlane.xlu1 %735  ;;  %v782_v20 = vpack.c.bf16 %v771_v16, %v770_v3 }
 0x25e   : > { %1435 = vrcp.f32 %v736_v17 }
 0x25f   : > { %v739_v7 = vpop.xlane.xlu0 %738 }
 0x260   : > { %1437 = vrcp.f32 %v739_v7  ;;  %v1432_v4 = vpop.eup %1431  ;;  %v1768_v7 = vld [vmem:[%s1724_s8 + $0x40] sm:$0xff] }
 0x261   : > { %1236 = vmatmul.mubr.msk.bf16.gmra.mrb[12].mxu1 %vm613_vm0, %v782_v20  ;;  %v772_v24 = vmul.f32 %v1432_v4, %v1654_v26  ;;  %v277_v4 = vld [vmem:[%s1724_s8 + $0x50] sm:$0xff] }
 0x262   : > { %v1434_v21 = vpop.eup %1433  ;;  %890 = vmatprep.mubr.bf16.mxu1 %v1453_v30 }
 0x263   : > { %v773_v6 = vmul.f32 %v1434_v21, %v1658_v29 }
 0x265   : > { %v742_v23 = vpop.xlane.xlu1 %741  ;;  %v783_v25 = vpack.c.bf16 %v773_v6, %v772_v24  ;;  %v1773_v6 = vld [vmem:[%s1724_s8 + $0x48] sm:$0xff]  ;;  %v278_v24 = vld [vmem:[%s1724_s8 + $0x58] sm:$0xff] }
 0x266   : > { %1439 = vrcp.f32 %v742_v23 }
 0x267   : > { %v745_v18 = vpop.xlane.xlu0 %744 }
 0x268   : > { %1441 = vrcp.f32 %v745_v18  ;;  %v1436_v15 = vpop.eup %1435 }
 0x269   : > { %1237 = vmatmul.mubr.msk.bf16.gmra.mrb[16].mxu1 %vm613_vm0, %v783_v25  ;;  %v774_v31 = vmul.f32 %v1436_v15, %v1666_v37 }
 0x26a   : > { %v1438_v11 = vpop.eup %1437  ;;  %900 = vmatprep.mubr.bf16.mxu1 %v1453_v30 }
 0x26b   : > { %v775_v28 = vmul.f32 %v1438_v11, %v1670_v40  ;;  %v1719_v40 = vstv %s929_s29 }
 0x26d   : > { %v748_v14 = vpop.xlane.xlu1 %747  ;;  %v784_v29 = vpack.c.bf16 %v775_v28, %v774_v31 }
 0x26e   : > { %1443 = vrcp.f32 %v748_v14 }
 0x270   : > { %v1440_v32 = vpop.eup %1439 }
 0x271   : > { %1238 = vmatmul.mubr.msk.bf16.gmra.mrb[20].mxu1 %vm613_vm0, %v784_v29  ;;  %v776_v34 = vmul.f32 %v1440_v32, %v1675_v22  ;;  %v1728_v22 = vld [vmem:[%s1724_s8] sm:$0xff] }
 0x272   : > { %v1442_v26 = vpop.eup %1441  ;;  %910 = vmatprep.mubr.bf16.mxu1 %v1453_v30 }
 0x273   : > { %v777_v33 = vmul.f32 %v1442_v26, %v1679_v47  ;;  %v1732_v47 = vld [vmem:[%s1724_s8 + $0x10] sm:$0xff] }
 0x275   : > { %v785_v36 = vpack.c.bf16 %v777_v33, %v776_v34  ;;  %v279_v34 = vld [vmem:[%s1724_s8 + $0x60] sm:$0xff] }
 0x278   : > { %v1444_v19 = vpop.eup %1443 }
 0x279   : > { %1239 = vmatmul.mubr.msk.bf16.gmra.mrb[24].mxu1 %vm613_vm0, %v785_v36  ;;  %v778_v37 = vmul.f32 %v1444_v19, %v1683_v27  ;;  %v1735_v27 = vld [vmem:[%s1724_s8 + $0x8] sm:$0xff]  ;;  %v281_v19 = vld [vmem:[%s1724_s8 + $0x70] sm:$0xff] }
 0x27a   : > { %920 = vmatprep.mubr.bf16.mxu1 %v1453_v30 }
 0x27b   : > { %v786_v39 = vpack.c.bf16 %v778_v37, %v778_v37 }
 0x281   : > { %1240 = vmatmul.mubr.msk.bf16.gmra.mrb[28].mxu1 %vm613_vm0, %v786_v39  ;;  %v280_v39 = vld [vmem:[%s1724_s8 + $0x68] sm:$0xff] }
 0x282   : > { %1082 = vmatprep.mubr.bf16.mxu1 %v1453_v30 }
 0x31c   : > { %v852_v41 = vpop.f32.mrb[0].mxu1 }
 0x31d   : > { %v931_v42 = vmul.f32 %v1719_v40, %v852_v41  ;;  %v854_v44 = vpop.f32.mrb[1].mxu1 }
 0x31e   : > { %v932_v45 = vmul.f32 %v1719_v40, %v854_v44  ;;  %v856_v49 = vpop.f32.mrb[2].mxu1 }
 0x31f   : > { %v933_v50 = vmul.f32 %v1719_v40, %v856_v49  ;;  %v858_v38 = vpop.f32.mrb[3].mxu1  ;;  %v961_v43 = vadd.f32 %v931_v42, %v1728_v22  ;;  %v282_v42 = vld [vmem:[%s1724_s8 + $0x78] sm:$0xff] }
 0x320   : > { %v934_v52 = vmul.f32 %v1719_v40, %v858_v38  ;;  %v962_v46 = vadd.f32 %v932_v45, %v1735_v27 }
 0x321   : > { %v963_v55 = vadd.f32 %v933_v50, %v1732_v47 }
 0x322   : > { %v964_v56 = vadd.f32 %v934_v52, %v1739_v35 }
 0x323   : > { %v996_v58 = vpack.c.bf16 %v963_v55, %v961_v43 }
 0x324   : > { %v862_v51 = vpop.f32.mrb[4].mxu1  ;;  %v997_v60 = vpack.c.bf16 %v964_v56, %v962_v46 }
 0x325   : > { %v935_v61 = vmul.f32 %v1719_v40, %v862_v51  ;;  %v864_v54 = vpop.f32.mrb[5].mxu1  ;;  %v283_v51 = vld [vmem:[%s1724_s8 + $0x80] sm:$0xff] }
 0x326   : > { %v936_v1 = vmul.f32 %v1719_v40, %v864_v54  ;;  %v866_v5 = vpop.f32.mrb[6].mxu1  ;;  %1040 = vmatprep.subr.bf16.mxu0 %v997_v60  ;;  %1315 = vmatprep.subr.bf16.mxu1 %v997_v60 }
 0x327   : > { %v937_v48 = vmul.f32 %v1719_v40, %v866_v5  ;;  %v868_v8 = vpop.f32.mrb[7].mxu1  ;;  %1041 = vmatpush1.bf16.msra.mxu0 %v996_v58  ;;  %1323 = vmatpush1.bf16.msra.mxu1 %v996_v58  ;;  %v965_v62 = vadd.f32 %v935_v61, %v1748_v0  ;;  %v285_v61 = vld [vmem:[%s1724_s8 + $0x90] sm:$0xff] }
 0x328   : > { %v938_v9 = vmul.f32 %v1719_v40, %v868_v8  ;;  %v966_v12 = vadd.f32 %v936_v1, %v1755_v59  ;;  %v284_v1 = vld [vmem:[%s1724_s8 + $0x88] sm:$0xff] }
 0x329   : > { %v967_v10 = vadd.f32 %v937_v48, %v1752_v2  ;;  %v286_v48 = vld [vmem:[%s1724_s8 + $0x98] sm:$0xff] }
 0x32a   : > { %v968_v57 = vadd.f32 %v938_v9, %v1759_v53 }
 0x32b   : > { %v998_v63 = vpack.c.bf16 %v967_v10, %v965_v62 }
 0x32c   : > { %v872_v13 = vpop.f32.mrb[8].mxu1  ;;  %v999_v16 = vpack.c.bf16 %v968_v57, %v966_v12 }
 0x32d   : > { %v939_v17 = vmul.f32 %v1719_v40, %v872_v13  ;;  %v874_v3 = vpop.f32.mrb[9].mxu1 }
 0x32e   : > { %v940_v20 = vmul.f32 %v1719_v40, %v874_v3  ;;  %v876_v21 = vpop.f32.mrb[10].mxu1  ;;  %1042 = vmatprep.subr.bf16.mxu0 %v999_v16  ;;  %1316 = vmatprep.subr.bf16.mxu1 %v999_v16 }
 0x32f   : > { %v941_v23 = vmul.f32 %v1719_v40, %v876_v21  ;;  %v878_v18 = vpop.f32.mrb[11].mxu1  ;;  %1043 = vmatpush1.bf16.msra.mxu0 %v998_v63  ;;  %1324 = vmatpush1.bf16.msra.mxu1 %v998_v63  ;;  %v969_v15 = vadd.f32 %v939_v17, %v1768_v7  ;;  %v289_v21 = vld [vmem:[%s1724_s8 + $0xb0] sm:$0xff] }
 0x330   : > { %v942_v25 = vmul.f32 %v1719_v40, %v878_v18  ;;  %v970_v28 = vadd.f32 %v940_v20, %v1773_v6  ;;  %v287_v20 = vld [vmem:[%s1724_s8 + $0xa0] sm:$0xff] }
 0x331   : > { %v971_v11 = vadd.f32 %v941_v23, %v277_v4 }
 0x332   : > { %v972_v14 = vadd.f32 %v942_v25, %v278_v24  ;;  %v288_v24 = vld [vmem:[%s1724_s8 + $0xa8] sm:$0xff]  ;;  %v290_v25 = vld [vmem:[%s1724_s8 + $0xb8] sm:$0xff] }
 0x333   : > { %v1000_v31 = vpack.c.bf16 %v971_v11, %v969_v15 }
 0x334   : > { %v882_v29 = vpop.f32.mrb[12].mxu1  ;;  %v1001_v32 = vpack.c.bf16 %v972_v14, %v970_v28 }
 0x335   : > { %v943_v26 = vmul.f32 %v1719_v40, %v882_v29  ;;  %v884_v33 = vpop.f32.mrb[13].mxu1 }
 0x336   : > { %v944_v36 = vmul.f32 %v1719_v40, %v884_v33  ;;  %v886_v37 = vpop.f32.mrb[14].mxu1  ;;  %1044 = vmatprep.subr.bf16.mxu0 %v1001_v32  ;;  %1317 = vmatprep.subr.bf16.mxu1 %v1001_v32 }
 0x337   : > { %v945_v41 = vmul.f32 %v1719_v40, %v886_v37  ;;  %v888_v44 = vpop.f32.mrb[15].mxu1  ;;  %1045 = vmatpush1.bf16.msra.mxu0 %v1000_v31  ;;  %1325 = vmatpush1.bf16.msra.mxu1 %v1000_v31  ;;  %v973_v49 = vadd.f32 %v943_v26, %v279_v34 }
 0x338   : > { %v946_v45 = vmul.f32 %v1719_v40, %v888_v44  ;;  %v974_v38 = vadd.f32 %v944_v36, %v280_v39  ;;  %v293_v39 = vld [vmem:[%s1724_s8 + $0xd0] sm:$0xff] }
 0x339   : > { %v975_v50 = vadd.f32 %v945_v41, %v281_v19  ;;  %v291_v19 = vld [vmem:[%s1724_s8 + $0xc0] sm:$0xff] }
 0x33a   : > { %v976_v52 = vadd.f32 %v946_v45, %v282_v42  ;;  %v292_v42 = vld [vmem:[%s1724_s8 + $0xc8] sm:$0xff]  ;;  %v294_v45 = vld [vmem:[%s1724_s8 + $0xd8] sm:$0xff] }
 0x33b   : > { %v1002_v43 = vpack.c.bf16 %v975_v50, %v973_v49 }
 0x33c   : > { %v892_v55 = vpop.f32.mrb[16].mxu1  ;;  %v1003_v46 = vpack.c.bf16 %v976_v52, %v974_v38 }
 0x33d   : > { %v947_v56 = vmul.f32 %v1719_v40, %v892_v55  ;;  %v894_v58 = vpop.f32.mrb[17].mxu1 }
 0x33e   : > { %v948_v60 = vmul.f32 %v1719_v40, %v894_v58  ;;  %v896_v54 = vpop.f32.mrb[18].mxu1  ;;  %1046 = vmatprep.subr.bf16.mxu0 %v1003_v46  ;;  %1318 = vmatprep.subr.bf16.mxu1 %v1003_v46 }
 0x33f   : > { %v949_v5 = vmul.f32 %v1719_v40, %v896_v54  ;;  %v898_v8 = vpop.f32.mrb[19].mxu1  ;;  %1047 = vmatpush1.bf16.msra.mxu0 %v1002_v43  ;;  %1326 = vmatpush1.bf16.msra.mxu1 %v1002_v43  ;;  %v977_v62 = vadd.f32 %v947_v56, %v283_v51  ;;  %v295_v56 = vld [vmem:[%s1724_s8 + $0xe0] sm:$0xff] }
 0x340   : > { %v950_v9 = vmul.f32 %v1719_v40, %v898_v8  ;;  %v978_v12 = vadd.f32 %v948_v60, %v284_v1 }
 0x341   : > { %v979_v10 = vadd.f32 %v949_v5, %v285_v61  ;;  %v296_v61 = vld [vmem:[%s1724_s8 + $0xe8] sm:$0xff] }
 0x342   : > { %v980_v57 = vadd.f32 %v950_v9, %v286_v48 }
 0x343   : > { %v1004_v63 = vpack.c.bf16 %v979_v10, %v977_v62 }
 0x344   : > { %v902_v13 = vpop.f32.mrb[20].mxu1  ;;  %v1005_v16 = vpack.c.bf16 %v980_v57, %v978_v12  ;;  %v1383_v57 = vld [vmem:[%s1865_s4] sm:$0xff]  }
 0x345   : > { %v951_v17 = vmul.f32 %v1719_v40, %v902_v13  ;;  %v904_v3 = vpop.f32.mrb[21].mxu1 }
 0x346   : > { %v952_v4 = vmul.f32 %v1719_v40, %v904_v3  ;;  %v906_v23 = vpop.f32.mrb[22].mxu1  ;;  %1048 = vmatprep.subr.bf16.mxu0 %v1005_v16  ;;  %1319 = vmatprep.subr.bf16.mxu1 %v1005_v16 }
 0x347   : > { %v953_v18 = vmul.f32 %v1719_v40, %v906_v23  ;;  %v908_v15 = vpop.f32.mrb[23].mxu1  ;;  %1049 = vmatpush1.bf16.msra.mxu0 %v1004_v63  ;;  %1327 = vmatpush1.bf16.msra.mxu1 %v1004_v63  ;;  %v981_v28 = vadd.f32 %v951_v17, %v287_v20  ;;  %v1384_v63 = vld [vmem:[%s1865_s4 + $0x10] ss:$0 sps:$4 sm:$0xff]  }
 0x348   : > { %v954_v11 = vmul.f32 %v1719_v40, %v908_v15  ;;  %v982_v31 = vadd.f32 %v952_v4, %v288_v24 }
 0x349   : > { %v983_v14 = vadd.f32 %v953_v18, %v289_v21 }
 0x34a   : > { %v984_v29 = vadd.f32 %v954_v11, %v290_v25 }
 0x34b   : > { %v1006_v32 = vpack.c.bf16 %v983_v14, %v981_v28 }
 0x34c   : > { %v912_v26 = vpop.f32.mrb[24].mxu1  ;;  %v1007_v33 = vpack.c.bf16 %v984_v29, %v982_v31 }
 0x34d   : > { %v955_v34 = vmul.f32 %v1719_v40, %v912_v26  ;;  %v914_v36 = vpop.f32.mrb[25].mxu1 }
 0x34e   : > { %v956_v37 = vmul.f32 %v1719_v40, %v914_v36  ;;  %v916_v41 = vpop.f32.mrb[26].mxu1  ;;  %1050 = vmatprep.subr.bf16.mxu0 %v1007_v33  ;;  %1320 = vmatprep.subr.bf16.mxu1 %v1007_v33 }
 0x34f   : > { %v957_v44 = vmul.f32 %v1719_v40, %v916_v41  ;;  %v918_v49 = vpop.f32.mrb[27].mxu1  ;;  %1051 = vmatpush1.bf16.msra.mxu0 %v1006_v32  ;;  %1328 = vmatpush1.bf16.msra.mxu1 %v1006_v32  ;;  %v985_v38 = vadd.f32 %v955_v34, %v291_v19 }
 0x350   : > { %v958_v50 = vmul.f32 %v1719_v40, %v918_v49  ;;  %v986_v43 = vadd.f32 %v956_v37, %v292_v42 }
 0x351   : > { %v987_v52 = vadd.f32 %v957_v44, %v293_v39 }
 0x352   : > { %v988_v55 = vadd.f32 %v958_v50, %v294_v45 }
 0x353   : > { %v1008_v46 = vpack.c.bf16 %v987_v52, %v985_v38 }
 0x354   : > { %v922_v58 = vpop.f32.mrb[28].mxu1  ;;  %v1009_v51 = vpack.c.bf16 %v988_v55, %v986_v43 }
 0x355   : > { %v959_v60 = vmul.f32 %v1719_v40, %v922_v58  ;;  %v924_v54 = vpop.f32.mrb[29].mxu1 }
 0x356   : > { %v960_v1 = vmul.f32 %v1719_v40, %v924_v54  ;;  %v926_v5 = vpop.f32.mrb[30].mxu1  ;;  %1052 = vmatprep.subr.bf16.mxu0 %v1009_v51  ;;  %1321 = vmatprep.subr.bf16.mxu1 %v1009_v51  ;;  %v1382_v40 = vld [vmem:[%s1865_s4 + $0x8] sm:$0xff]  }
 0x357   : > { %v989_v48 = vadd.f32 %v959_v60, %v295_v56  ;;  %v927_v8 = vpop.f32.mrb[31].mxu1  ;;  %1053 = vmatpush1.bf16.msra.mxu0 %v1008_v46  ;;  %1329 = vmatpush1.bf16.msra.mxu1 %v1008_v46 }
 0x358   : > { %v990_v9 = vadd.f32 %v960_v1, %v296_v61 }
 0x359   : > { %v1010_v62 = vpack.c.bf16 %v989_v48, %v989_v48 }
 0x35a   : > { %v1011_v10 = vpack.c.bf16 %v990_v9, %v990_v9 }
 0x35b   : > { %v1035_v12 = vsel %vm811_vm1, %v1010_v62, 0 }
 0x35c   : > { %1244 = vmatprep.subr.msk.bf16.mxu0 %vm811_vm1, %v1011_v10  ;;  %1322 = vmatprep.subr.msk.bf16.mxu1 %vm811_vm1, %v1011_v10 }
 0x35d   : > { %1055 = vmatpush1.bf16.msra.mxu0 %v1035_v12  ;;  %1330 = vmatpush1.bf16.msra.mxu1 %v1035_v12 }
 0x360   : > { %1246 = vmatmul.mubr.msk.bf16.vlgmr.msra.gmra.mrb[32].mxu1 %vm613_vm0, %v1382_v40  ;;  %1245 = vmatmul.mubr.msk.bf16.vlgmr.msra.gmra.mrb[32].mxu0 %vm613_vm0, %v1383_v57 }
 0x361   : > { %1092 = vmatprep.mubr.bf16.mxu1 %v1453_v30 }
 0x368   : > { %1247 = vmatmul.mubr.msk.bf16.gmra.mrb[36].mxu1 %vm613_vm0, %v1384_v63 }
 0x433   : > { %v1084_v13 = vpop.f32.mrb[32].mxu1  ;;  %v1074_v16 = vpop.f32.mrb[32].mxu0 }
 0x434   : > { %v1085_v17 = vadd.f32 %v1084_v13, %v1748_v0  ;;  %v1086_v30 = vpop.f32.mrb[33].mxu1  ;;  %v1075_v3 = vadd.f32 %v1074_v16, %v1728_v22  ;;  %v1076_v20 = vpop.f32.mrb[33].mxu0 }
 0x435   : > { %v1087_v4 = vadd.f32 %v1086_v30, %v1755_v59  ;;  %v1088_v21 = vpop.f32.mrb[34].mxu1  ;;  %v1077_v23 = vadd.f32 %v1076_v20, %v1735_v27  ;;  %v1078_v24 = vpop.f32.mrb[34].mxu0 }
 0x436   : > { %1105 = vst [vmem:[%s1836_s18 + $0x20] sm:$0xff] %v1085_v17  ;;  %v1089_v18 = vadd.f32 %v1088_v21, %v1752_v2  ;;  %v1090_v25 = vpop.f32.mrb[35].mxu1  ;;  %1101 = vst [vmem:[%s1836_s18] sm:$0xff] %v1075_v3  ;;  %v1079_v0 = vadd.f32 %v1078_v24, %v1732_v47  ;;  %v1080_v22 = vpop.f32.mrb[35].mxu0 }
 0x437   : > { %1106 = vst [vmem:[%s1836_s18 + $0x28] sm:$0xff] %v1087_v4  ;;  %v1091_v15 = vadd.f32 %v1090_v25, %v1759_v53  ;;  %1102 = vst [vmem:[%s1836_s18 + $0x8] sm:$0xff] %v1077_v23  ;;  %v1081_v59 = vadd.f32 %v1080_v22, %v1739_v35 }
 0x438   : > { %1107 = vst [vmem:[%s1836_s18 + $0x30] sm:$0xff] %v1089_v18  ;;  %1103 = vst [vmem:[%s1836_s18 + $0x10] sm:$0xff] %v1079_v0 }
 0x439   : > { %1108 = vst [vmem:[%s1836_s18 + $0x38] sm:$0xff] %v1091_v15  ;;  %1104 = vst [vmem:[%s1836_s18 + $0x18] sm:$0xff] %v1081_v59 }
 0x43b   : > { %v1094_v27 = vpop.f32.mrb[36].mxu1 }
 0x43c   : > { %v1095_v2 = vadd.f32 %v1094_v27, %v1768_v7  ;;  %v1096_v11 = vpop.f32.mrb[37].mxu1 }
 0x43d   : > { %v1097_v28 = vadd.f32 %v1096_v11, %v1773_v6  ;;  %v1098_v14 = vpop.f32.mrb[38].mxu1 }
 0x43e   : > { %1109 = vst [vmem:[%s1836_s18 + $0x40] sm:$0xff] %v1095_v2  ;;  %v1099_v47 = vpop.f32.mrb[39].mxu1 }
 0x43f   : > { %1110 = vst [vmem:[%s1836_s18 + $0x48] sm:$0xff] %v1097_v28 }
 0x440 PF: > { %s16_s20 = sadd.s32 1, %s1451_s20  }
 0x441   : > { %p13_p4 = scmp.ge.s32.totalorder %s16_s20, 4  }
 0x443   :  { %15 = sbr.rel (!%p13_p4) target bundleno = 2 (0x2), region = 76 }

</bundles_post_ra>
